<compile_context>
chip_gen: v5e
topology: v5e:2x2
jax: 0.10.0
libtpu: 0.0.40
codegen_flags: <defaults>
</compile_context>

<pallas_src>
import jax
import jax.numpy as jnp
from jax.experimental import pallas as pl
from jax.experimental.pallas import tpu as pltpu


def _bce_masked_kernel(x_ref, y_ref, w_ref, o_ref):
    # x_ref/y_ref/w_ref: (bt, L), o_ref: (bt, 1)
    x = x_ref[...].astype(jnp.float32)
    y = y_ref[...].astype(jnp.float32)
    w = w_ref[...].astype(jnp.float32)
    # Numerically stable BCE-with-logits.
    loss = (jnp.maximum(x, 0.0) - x * y + jnp.log1p(jnp.exp(-jnp.abs(x)))) * w
    o_ref[...] = jnp.mean(loss, axis=1, keepdims=True)


def _bce_kernel(x_ref, y_ref, o_ref):
    x = x_ref[...].astype(jnp.float32)
    y = y_ref[...].astype(jnp.float32)
    loss = jnp.maximum(x, 0.0) - x * y + jnp.log1p(jnp.exp(-jnp.abs(x)))
    o_ref[...] = jnp.mean(loss, axis=1, keepdims=True)


def _round_up(x, m):
    return ((x + m - 1) // m) * m


def _choose_block_rows(B, L, itemsize, n_arrays):
    # Target ~2 MiB of input per grid step. Pallas double-buffers each input,
    # so VMEM use per step is roughly 2 * n_arrays * bt * L * itemsize.
    budget = 2 * 1024 * 1024
    bt = budget // max(1, n_arrays * L * itemsize)
    bt = max(8, min(bt, 2048))
    bt = (bt // 8) * 8               # sublane-aligned tile
    bt = min(bt, _round_up(B, 8))    # never bigger than the (padded) batch
    return bt


def sigmoid_bce_loss(inputs, targets, mask=None):
    """binary_cross_entropy_with_logits(..., reduction='none').mean(dim=1)."""
    assert inputs.ndim == 2, inputs.shape
    B, L = inputs.shape
    n_arrays = 2 if mask is None else 3
    bt = _choose_block_rows(B, L, jnp.dtype(inputs.dtype).itemsize, n_arrays)
    b_pad = _round_up(B, bt)

    def pad_rows(a):
        if b_pad == B:
            return a
        return jnp.pad(a, ((0, b_pad - B), (0, 0)))

    operands = [pad_rows(inputs), pad_rows(targets)]
    if mask is not None:
        operands.append(pad_rows(mask))

    row_spec = pl.BlockSpec((bt, L), lambda i: (i, 0))
    out = pl.pallas_call(
        _bce_kernel if mask is None else _bce_masked_kernel,
        out_shape=jax.ShapeDtypeStruct((b_pad, 1), jnp.float32),
        grid=(b_pad // bt,),
        in_specs=[row_spec] * n_arrays,
        out_specs=pl.BlockSpec((bt, 1), lambda i: (i, 0)),
        compiler_params=pltpu.CompilerParams(
            dimension_semantics=("parallel",),
            vmem_limit_bytes=32 * 1024 * 1024,
        ),
    )(*operands)
    return out[:B, 0]


if __name__ == "__main__":
    key = jax.random.PRNGKey(0)
    k_x, k_y, k_m = jax.random.split(key, 3)

    # Shapes matching the skip-gram usage: logits reshaped to label shape (B, L).
    B, L = 2, 8
    inputs = jax.random.normal(k_x, (B, L), dtype=jnp.float32)
    targets = jax.random.bernoulli(k_y, 0.5, (B, L)).astype(jnp.float32)
    mask = jax.random.bernoulli(k_m, 0.7, (B, L)).astype(jnp.float32)

    out_masked = jax.block_until_ready(sigmoid_bce_loss(inputs, targets, mask))
    out_plain = jax.block_until_ready(sigmoid_bce_loss(inputs, targets))

    # Pure-JAX reference (independent formulation via log-sigmoid).
    def ref_loss(x, y, w=None):
        per = -(y * jax.nn.log_sigmoid(x) + (1.0 - y) * jax.nn.log_sigmoid(-x))
        if w is not None:
            per = per * w
        return per.mean(axis=1)

    assert out_masked.shape == (B,), out_masked.shape
    assert out_plain.shape == (B,), out_plain.shape
    assert jnp.allclose(out_masked, ref_loss(inputs, targets, mask),
                        atol=1e-5, rtol=1e-5)
    assert jnp.allclose(out_plain, ref_loss(inputs, targets),
                        atol=1e-5, rtol=1e-5)

    print("KERNEL_OK")
</pallas_src>

<mosaic_0001>
module attributes {stable_mosaic.version = 11 : i64} {
  func.func @_bce_masked_kernel(%arg0: i32, %arg1: memref<8x8xf32, #tpu.memory_space<vmem>>, %arg2: memref<8x8xf32, #tpu.memory_space<vmem>>, %arg3: memref<8x8xf32, #tpu.memory_space<vmem>>, %arg4: memref<8x1xf32, #tpu.memory_space<vmem>>) attributes {dimension_semantics = [#tpu.dimension_semantics<parallel>], iteration_bounds = array<i64: 1>, scalar_prefetch = 0 : i64, scratch_operands = 0 : i64, tpu.core_type = #tpu.core_type<tc>, window_params = [{transform_indices = @transform_0, window_bounds = array<i64: 8, 8>}, {transform_indices = @transform_1, window_bounds = array<i64: 8, 8>}, {transform_indices = @transform_2, window_bounds = array<i64: 8, 8>}, {transform_indices = @transform_3, window_bounds = array<i64: 8, 1>}]} {
    %c0 = arith.constant 0 : index
    %c0_0 = arith.constant 0 : index
    %0 = vector.load %arg1[%c0, %c0_0] : memref<8x8xf32, #tpu.memory_space<vmem>>, vector<8x8xf32>
    %c0_1 = arith.constant 0 : index
    %c0_2 = arith.constant 0 : index
    %1 = vector.load %arg2[%c0_1, %c0_2] : memref<8x8xf32, #tpu.memory_space<vmem>>, vector<8x8xf32>
    %c0_3 = arith.constant 0 : index
    %c0_4 = arith.constant 0 : index
    %2 = vector.load %arg3[%c0_3, %c0_4] : memref<8x8xf32, #tpu.memory_space<vmem>>, vector<8x8xf32>
    %cst = arith.constant 0.000000e+00 : f32
    %3 = vector.broadcast %cst : f32 to vector<8x8xf32>
    %4 = arith.maximumf %0, %3 : vector<8x8xf32>
    %5 = arith.mulf %0, %1 : vector<8x8xf32>
    %6 = arith.subf %4, %5 : vector<8x8xf32>
    %7 = math.absf %0 : vector<8x8xf32>
    %cst_5 = arith.constant 0.000000e+00 : f32
    %8 = vector.broadcast %cst_5 : f32 to vector<8x8xf32>
    %9 = arith.subf %8, %7 : vector<8x8xf32>
    %10 = math.exp %9 : vector<8x8xf32>
    %11 = math.log1p %10 : vector<8x8xf32>
    %12 = arith.addf %6, %11 : vector<8x8xf32>
    %13 = arith.mulf %12, %2 : vector<8x8xf32>
    %cst_6 = arith.constant dense<0.000000e+00> : vector<8xf32>
    %14 = vector.multi_reduction <add>, %13, %cst_6 [1] : vector<8x8xf32> to vector<8xf32>
    %15 = vector.shape_cast %14 : vector<8xf32> to vector<8x1xf32>
    %cst_7 = arith.constant 8.000000e+00 : f32
    %16 = vector.broadcast %cst_7 : f32 to vector<8x1xf32>
    %17 = arith.divf %15, %16 : vector<8x1xf32>
    %c0_8 = arith.constant 0 : index
    %c0_9 = arith.constant 0 : index
    %18 = vector.load %arg4[%c0_8, %c0_9] : memref<8x1xf32, #tpu.memory_space<vmem>>, vector<8x1xf32>
    tpu.vector_store %arg4[%c0_8, %c0_9], %17 {strides = array<i32>} : memref<8x1xf32, #tpu.memory_space<vmem>>, vector<8x1xf32>,
    return
  }
  func.func @transform_0(%arg0: i32) -> (i32, i32) {
    %c0_i32 = arith.constant 0 : i32
    %c0_i32_0 = arith.constant 0 : i32
    return %arg0, %c0_i32 : i32, i32
  }
  func.func @transform_1(%arg0: i32) -> (i32, i32) {
    %c0_i32 = arith.constant 0 : i32
    %c0_i32_0 = arith.constant 0 : i32
    return %arg0, %c0_i32 : i32, i32
  }
  func.func @transform_2(%arg0: i32) -> (i32, i32) {
    %c0_i32 = arith.constant 0 : i32
    %c0_i32_0 = arith.constant 0 : i32
    return %arg0, %c0_i32 : i32, i32
  }
  func.func @transform_3(%arg0: i32) -> (i32, i32) {
    %c0_i32 = arith.constant 0 : i32
    %c0_i32_0 = arith.constant 0 : i32
    return %arg0, %c0_i32 : i32, i32
  }
}

</mosaic_0001>

<bundles_post_ra>
// kernel: tpu_custom_call.1
= control target key start
LH: loop header
LB: loop body
LE: loop exit
PB: predicated region body
PF: predicated region fallthrough
CT: control target
= control target key end

     0   :  { %8 = vsyncpa [#allocation3], 0  ;;  %s218_s0 = inlined_call_operand.hbm [shape: f32[8,8], index: 0, kind: input, shape index: {}]   ;;  %s219_s1 = inlined_call_operand.hbm [shape: f32[8,8], index: 1, kind: input, shape index: {}]   ;;  %s220_s2 = inlined_call_operand.hbm [shape: f32[8,8], index: 2, kind: input, shape index: {}]   ;;  %s221_s3 = inlined_call_operand.vmem [shape: f32[8,1], index: 3, kind: output, shape index: {}]  }
   0x1   :  { %9 = vsyncpa [#allocation5], 0  ;;  %s26_s14 = sshll.u32 %s219_s1, 4  ;;  %s182_s15 = smov [#allocation4]   ;;  %s27_s14 = int_to_ptr.hbm [resolvable:$true] %s26_s14 }
   0x2   :  { %s28_s16 = sshll.u32 %s182_s15, 4  ;;  %s15_s19 = sshll.u32 %s218_s0, 4  ;;  %s29_s16 = int_to_ptr.vmem [resolvable:$true] %s28_s16  ;;  %s16_s19 = int_to_ptr.hbm [resolvable:$true] %s15_s19 }
   0x3   :  { %31 = dma.hbm_to_vmem [thread:$0]  %s27_s14, 128, %s29_s16, [#allocation5]  }
   0x4   :  { %s183_s20 = smov [#allocation2]   ;;  %s37_s24 = sshll.u32 %s220_s2, 4  ;;  %s38_s24 = int_to_ptr.hbm [resolvable:$true] %s37_s24 }
   0x5   :  { %s17_s21 = sshll.u32 %s183_s20, 4  ;;  %s184_s1 = smov [#allocation6]   ;;  %s18_s21 = int_to_ptr.vmem [resolvable:$true] %s17_s21 }
   0x6   :  { %20 = dma.hbm_to_vmem [thread:$0]  %s16_s19, 128, %s18_s21, [#allocation3]  }
   0x7   :  { %s39_s25 = sshll.u32 %s184_s1, 4  ;;  %s40_s25 = int_to_ptr.vmem [resolvable:$true] %s39_s25 }
   0x8   :  { %42 = dma.hbm_to_vmem [thread:$0]  %s38_s24, 128, %s40_s25, [#allocation5]  }
   0x9   :  { %178 = dma.done.wait [#allocation3], 128  }
   0xa   :  { %179 = vsyncadd [#allocation3], 4294967168 }
   0xb   :  { %180 = dma.done.wait [#allocation5], 256  }
   0xc   :  { %181 = vsyncadd [#allocation5], 4294967040  ;;  %v55_v0 = vld [vmem:[#allocation2] sm:$0xff]  ;;  %v56_v7 = vld [vmem:[#allocation4] sm:$0xff]  ;;  %vm76_vm1 = vcmask 64512   ;;  %v185_v21 = vmov 8.0  }
   0xd   :  { %v61_v1 = vand.u32 2147483647, %v55_v0  ;;  %v58_v9 = vmax.f32 %v55_v0, 0.0  ;;  %v59_v10 = vmul.f32 %v56_v7, %v55_v0  ;;  %v57_v16 = vld [vmem:[#allocation6] sm:$0xff]  ;;  %vm88_vm3 = vcmask 7168  }
   0xf   :  { %v62_v2 = vsub.f32 0.0, %v61_v1  ;;  %v60_v14 = vsub.f32 %v58_v9, %v59_v10 }
  0x11   :  { %v63_v3 = vmul.f32 1.442695, %v62_v2 }
  0x13   :  { %100 = vpow2.f32 %v63_v3 }
  0x19   :  { %v101_v4 = vpop.eup %100 }
  0x1a   :  { %v65_v5 = vadd.f32 1.0, %v101_v4  ;;  %v68_v6 = vmul.f32 -0.5, %v101_v4  ;;  %v71_v11 = vand.u32 2147483647, %v101_v4 }
  0x1c   :  { %102 = vlog2.f32 %v65_v5  ;;  %v69_v8 = vadd.f32 1.0, %v68_v6  ;;  %vm72_vm0 = vcmp.lt.f32.partialorder %v71_v11, 0.0004427343 }
  0x1d   :  { %104 = vrcp.f32 %v185_v21 }
  0x1e   :  { %v70_v12 = vmul.f32 %v101_v4, %v69_v8 }
  0x22   :  { %v103_v13 = vpop.eup %102 }
  0x23   :  { %v67_v15 = vmul.f32 0.6931472, %v103_v13  ;;  %v105_v22 = vpop.eup %104 }
  0x24   :  { %v81_v23 = vmul.f32 8.0, %v105_v22  ;;  %vm85_vm2 = vweird.f32 %v105_v22 }
  0x25   :  { %v73_v17 = vsel %vm72_vm0, %v70_v12, %v67_v15 }
  0x26   :  { %v74_v18 = vadd.f32 %v73_v17, %v60_v14  ;;  %v82_v24 = vsub.f32 1.0, %v81_v23 }
  0x28   :  { %v75_v19 = vmul.f32 %v74_v18, %v57_v16  ;;  %v83_v25 = vmul.f32 %v105_v22, %v82_v24 }
  0x2a   :  { %v77_v20 = vsel %vm76_vm1, %v75_v19, 0.0  ;;  %v84_v26 = vadd.f32 %v105_v22, %v83_v25 }
  0x2b   :  { %78 = vadd.xlane.f32.xlu0 %v77_v20 }
  0x2c   :  { %v86_v27 = vsel %vm85_vm2, %v105_v22, %v84_v26 }
  0x9e   :  { %v79_v28 = vpop.xlane.xlu0 %78 }
  0x9f   :  { %v87_v29 = vmul.f32 %v86_v27, %v79_v28 }
  0xa1   :  { %89 = vst.msk [vmem:[%s221_s3] sm:$0xff] %vm88_vm3, %v87_v29 }
  0xa2   :  { %94 = vsyncpa [#allocation3], 1 }
  0xa3   :  { %95 = vsyncpa [#allocation5], 1 }

</bundles_post_ra>
